<compile_context>
chip_gen: v5e
topology: v5e:2x2
jax: 0.10.0
libtpu: 0.0.40
codegen_flags: <defaults>
</compile_context>

<pallas_src>
import functools
from typing import NamedTuple, Tuple

import jax
import jax.numpy as jnp
from jax.experimental import pallas as pl
from jax.experimental.pallas import tpu as pltpu

_LANE = 128   # lane width (last dim)
_SUBLANE = 8  # sublane width for f32 (second-to-last dim)


def _round_up(n, m):
    return ((n + m - 1) // m) * m


def _choose_tile_b(B):
    """MXU-friendly batch tile that avoids pathological padding."""
    B8 = _round_up(B, _SUBLANE)
    if B8 <= 256:
        return B8  # single tile, no extra batch padding
    # Prefer the tile (from a small MXU-friendly set) minimizing padded waste,
    # then the largest tile (amortizes ~0.35us per grid step).
    best_t, best_key = None, None
    for t in (512, 384, 256, 192, 128):
        waste = _round_up(B8, t) - B8
        key = (waste, -t)
        if best_key is None or key < best_key:
            best_key, best_t = key, t
    return best_t


class PreparedMLP(NamedTuple):
    weights: Tuple[jax.Array, ...]   # padded (din_pad, dout_pad), compute_dtype
    biases: jax.Array                # packed (L, Dmax_pad), float32
    din: int
    dout: int
    din_pad: int
    dout_pads: Tuple[int, ...]
    compute_dtype: jnp.dtype


def prepare_mlp_params(params, compute_dtype=jnp.bfloat16):
    """One-time prep: zero-pad to lane-dense shapes, cast weights to compute
    dtype (bf16 MXU fast path), pack biases (kept f32) into one array."""
    din = params[0][0].shape[0]
    dout = params[-1][0].shape[1]
    din_pad0 = _round_up(din, _LANE)

    weights, b_list, dout_pads = [], [], []
    in_pad = din_pad0
    for (w, b) in params:
        d_in, d_out = w.shape
        d_out_pad = _round_up(d_out, _LANE)
        w_p = jnp.pad(w.astype(jnp.float32),
                      ((0, in_pad - d_in), (0, d_out_pad - d_out)))
        weights.append(w_p.astype(compute_dtype))
        b_list.append(jnp.pad(b.astype(jnp.float32), (0, d_out_pad - d_out)))
        dout_pads.append(d_out_pad)
        in_pad = d_out_pad

    dmax = max(dout_pads)
    biases = jnp.stack(
        [jnp.pad(bb, (0, dmax - bb.shape[0])) for bb in b_list])  # (L, Dmax) f32

    return PreparedMLP(tuple(weights), biases, din, dout, din_pad0,
                       tuple(dout_pads), jnp.dtype(compute_dtype))


def _mlp_fused_kernel(x_ref, b_ref, *rest, n_layers, dout_pads,
                      negative_slope, compute_dtype):
    """rest = (w0, ..., w_{L-1}, out_ref).

    Static Python loop over layers; activations stay resident on-chip as traced
    values (vregs / VMEM), never touching HBM between layers."""
    w_refs = rest[:n_layers]
    out_ref = rest[n_layers]

    biases = b_ref[...]          # (L, Dmax) float32
    h = x_ref[...]               # (tile_b, din_pad), already compute_dtype
    for l in range(n_layers):
        dpad = dout_pads[l]
        y = jnp.dot(h, w_refs[l][...],
                    preferred_element_type=jnp.float32)   # MXU, f32 accumulate
        y = y + biases[l, :dpad][None, :]
        if l < n_layers - 1:                               # LeakyReLU(0.2)
            y = jnp.where(y >= 0, y, negative_slope * y)
            h = y.astype(compute_dtype)                    # next matmul input
        else:
            h = y
    out_ref[...] = h.astype(out_ref.dtype)


def mlp_forward(prep: PreparedMLP, x, *, negative_slope=0.2):
    """x: (B, Din) float32 -> (B, Dout) float32."""
    B, Din = x.shape
    assert Din == prep.din
    n_layers = len(prep.weights)
    comp_itemsize = prep.compute_dtype.itemsize

    # --- batch tiling (grid axis, "parallel") ---
    tile_b = _choose_tile_b(B)
    B_pad = _round_up(B, tile_b)
    # NOTE(v7x): for B <= 256 this yields grid=(1,) and one TC idles; with the
    # tiny demo batch that is irrelevant, but large-B inputs get >=2 tiles.

    x_p = jnp.pad(x.astype(jnp.float32),
                  ((0, B_pad - B), (0, prep.din_pad - Din)))
    x_p = x_p.astype(prep.compute_dtype)       # pre-cast in HBM (no in-kernel cast)

    dout_pad_last = prep.dout_pads[-1]

    # --- cost estimate ---
    flops = 0
    in_pad = prep.din_pad
    for dpad in prep.dout_pads:
        flops += 2 * B_pad * in_pad * dpad
        in_pad = dpad
    w_bytes = sum(int(w.size) * comp_itemsize for w in prep.weights)
    b_bytes = int(prep.biases.size) * 4
    bytes_accessed = (x_p.size * x_p.dtype.itemsize + w_bytes + b_bytes
                      + B_pad * dout_pad_last * 4)

    # --- explicit VMEM budget (worst case: double-buffered weights) ---
    max_dim = max((prep.din_pad,) + prep.dout_pads)
    vmem_est = (2 * (w_bytes + b_bytes)                       # weight/bias buffers
                + 2 * tile_b * prep.din_pad * comp_itemsize    # x double-buffer
                + 2 * tile_b * dout_pad_last * 4               # out double-buffer
                + 3 * tile_b * max_dim * 4)                    # live f32 activations
    vmem_limit = int(min(max(vmem_est * 1.5, 32 * 1024 * 1024),
                         128 * 1024 * 1024))

    kernel = functools.partial(
        _mlp_fused_kernel,
        n_layers=n_layers,
        dout_pads=prep.dout_pads,
        negative_slope=negative_slope,
        compute_dtype=prep.compute_dtype,
    )

    def _build_in_specs(single_buffer_weights):
        const_kwargs = {}
        if single_buffer_weights:
            # Constant index_map -> the block never changes; one buffer suffices.
            const_kwargs = dict(pipeline_mode=pl.Buffered(1))
        specs = [pl.BlockSpec((tile_b, prep.din_pad), lambda i: (i, 0))]
        specs.append(pl.BlockSpec(prep.biases.shape, lambda i: (0, 0),
                                  **const_kwargs))
        for w in prep.weights:
            specs.append(pl.BlockSpec(w.shape, lambda i: (0, 0), **const_kwargs))
        return specs

    def _call(in_specs):
        return pl.pallas_call(
            kernel,
            out_shape=jax.ShapeDtypeStruct((B_pad, dout_pad_last), jnp.float32),
            grid=(B_pad // tile_b,),
            in_specs=in_specs,
            out_specs=pl.BlockSpec((tile_b, dout_pad_last), lambda i: (i, 0)),
            compiler_params=pltpu.CompilerParams(
                dimension_semantics=("parallel",),
                vmem_limit_bytes=vmem_limit),
            cost_estimate=pl.CostEstimate(
                flops=flops, transcendentals=0, bytes_accessed=bytes_accessed),
        )(x_p, prep.biases, *prep.weights)

    try:
        out_p = _call(_build_in_specs(single_buffer_weights=True))
    except Exception:
        # Fallback for Pallas builds that reject Buffered(1); default
        # double-buffering is semantically identical, just uses 2x weight VMEM.
        out_p = _call(_build_in_specs(single_buffer_weights=False))

    return out_p[:B, :prep.dout]


def init_mlp_params(key, input_dim, output_dim, hidden_dim, num_layers):
    """Layer shapes matching the PyTorch module:
    Linear(in,h)+LReLU, num_layers x [Linear(h,h)+LReLU], Linear(h,out).
    Weights stored transposed: (in_features, out_features)."""
    dims = [(input_dim, hidden_dim)]
    dims += [(hidden_dim, hidden_dim)] * num_layers
    dims += [(hidden_dim, output_dim)]
    params = []
    for (din, dout) in dims:
        key, kw, kb = jax.random.split(key, 3)
        bound = 1.0 / jnp.sqrt(din)  # same scale family as nn.Linear default
        w = jax.random.uniform(kw, (din, dout), jnp.float32, -bound, bound)
        b = jax.random.uniform(kb, (dout,), jnp.float32, -bound, bound)
        params.append((w, b))
    return params


if __name__ == "__main__":
    key = jax.random.PRNGKey(0)
    batch, input_dim, hidden_dim, output_dim, num_layers = 8, 16, 32, 8, 2

    kx, kp = jax.random.split(key)
    x = jax.random.normal(kx, (batch, input_dim), jnp.float32)
    params = init_mlp_params(kp, input_dim, output_dim, hidden_dim, num_layers)

    # One-time parameter prep (pad + cast) outside the forward path.
    prep_bf16 = prepare_mlp_params(params, compute_dtype=jnp.bfloat16)  # fast path
    prep_f32 = prepare_mlp_params(params, compute_dtype=jnp.float32)    # exact path

    out = jax.block_until_ready(mlp_forward(prep_bf16, x))
    out_f32 = jax.block_until_ready(mlp_forward(prep_f32, x))
    assert out.shape == (batch, output_dim)

    # Pure-JAX f32 reference.
    ref = x
    for i, (w, b) in enumerate(params):
        ref = ref @ w + b
        if i < len(params) - 1:
            ref = jnp.where(ref >= 0, ref, 0.2 * ref)

    assert jnp.allclose(out_f32, ref, atol=1e-4, rtol=1e-4)   # exact f32 path
    assert jnp.allclose(out, ref, atol=5e-2, rtol=5e-2)       # bf16 MXU path

    print("KERNEL_OK")
</pallas_src>

<mosaic_0001>
module attributes {stable_mosaic.version = 11 : i64} {
  func.func @_mlp_fused_kernel(%arg0: i32, %arg1: memref<8x128xbf16, #tpu.memory_space<vmem>>, %arg2: memref<4x128xf32, #tpu.memory_space<vmem>>, %arg3: memref<128x128xbf16, #tpu.memory_space<vmem>>, %arg4: memref<128x128xbf16, #tpu.memory_space<vmem>>, %arg5: memref<128x128xbf16, #tpu.memory_space<vmem>>, %arg6: memref<128x128xbf16, #tpu.memory_space<vmem>>, %arg7: memref<8x128xf32, #tpu.memory_space<vmem>>) attributes {dimension_semantics = [#tpu.dimension_semantics<parallel>], iteration_bounds = array<i64: 1>, scalar_prefetch = 0 : i64, scratch_operands = 0 : i64, tpu.core_type = #tpu.core_type<tc>, window_params = [{transform_indices = @transform_0, window_bounds = array<i64: 8, 128>}, {pipeline_mode = #tpu.pipeline_mode<synchronous>, transform_indices = @transform_1, window_bounds = array<i64: 4, 128>}, {pipeline_mode = #tpu.pipeline_mode<synchronous>, transform_indices = @transform_2, window_bounds = array<i64: 128, 128>}, {pipeline_mode = #tpu.pipeline_mode<synchronous>, transform_indices = @transform_3, window_bounds = array<i64: 128, 128>}, {pipeline_mode = #tpu.pipeline_mode<synchronous>, transform_indices = @transform_4, window_bounds = array<i64: 128, 128>}, {pipeline_mode = #tpu.pipeline_mode<synchronous>, transform_indices = @transform_5, window_bounds = array<i64: 128, 128>}, {transform_indices = @transform_6, window_bounds = array<i64: 8, 128>}]} {
    %c0 = arith.constant 0 : index
    %c0_0 = arith.constant 0 : index
    %0 = vector.load %arg2[%c0, %c0_0] : memref<4x128xf32, #tpu.memory_space<vmem>>, vector<4x128xf32>
    %c0_1 = arith.constant 0 : index
    %c0_2 = arith.constant 0 : index
    %1 = vector.load %arg1[%c0_1, %c0_2] : memref<8x128xbf16, #tpu.memory_space<vmem>>, vector<8x128xbf16>
    %c0_3 = arith.constant 0 : index
    %c0_4 = arith.constant 0 : index
    %2 = vector.load %arg3[%c0_3, %c0_4] : memref<128x128xbf16, #tpu.memory_space<vmem>>, vector<128x128xbf16>
    %cst = arith.constant dense<0.000000e+00> : vector<8x128xf32>
    %3 = tpu.matmul %1, %2, %cst {dimension_numbers = #tpu.dot_dimension_numbers<[1], [0], [0], [1], [0, 0, 1, 1], [], []>} : vector<8x128xbf16>, vector<128x128xbf16>, vector<8x128xf32> -> vector<8x128xf32>
    %4 = vector.extract_strided_slice %0 {offsets = [0, 0], sizes = [1, 128], strides = [1, 1]} : vector<4x128xf32> to vector<1x128xf32>
    %5 = vector.shape_cast %4 : vector<1x128xf32> to vector<128xf32>
    %6 = vector.shape_cast %5 : vector<128xf32> to vector<1x128xf32>
    %7 = vector.broadcast %6 : vector<1x128xf32> to vector<8x128xf32>
    %8 = arith.addf %3, %7 : vector<8x128xf32>
    %cst_5 = arith.constant 0.000000e+00 : f32
    %9 = vector.broadcast %cst_5 : f32 to vector<8x128xf32>
    %10 = arith.cmpf oge, %8, %9 : vector<8x128xf32>
    %cst_6 = arith.constant 2.000000e-01 : f32
    %11 = vector.broadcast %cst_6 : f32 to vector<8x128xf32>
    %12 = arith.mulf %11, %8 : vector<8x128xf32>
    %13 = arith.select %10, %8, %12 : vector<8x128xi1>, vector<8x128xf32>
    %14 = arith.truncf %13 : vector<8x128xf32> to vector<8x128xbf16>
    %c0_7 = arith.constant 0 : index
    %c0_8 = arith.constant 0 : index
    %15 = vector.load %arg4[%c0_7, %c0_8] : memref<128x128xbf16, #tpu.memory_space<vmem>>, vector<128x128xbf16>
    %cst_9 = arith.constant dense<0.000000e+00> : vector<8x128xf32>
    %16 = tpu.matmul %14, %15, %cst_9 {dimension_numbers = #tpu.dot_dimension_numbers<[1], [0], [0], [1], [0, 0, 1, 1], [], []>} : vector<8x128xbf16>, vector<128x128xbf16>, vector<8x128xf32> -> vector<8x128xf32>
    %17 = vector.extract_strided_slice %0 {offsets = [1, 0], sizes = [1, 128], strides = [1, 1]} : vector<4x128xf32> to vector<1x128xf32>
    %18 = vector.shape_cast %17 : vector<1x128xf32> to vector<128xf32>
    %19 = vector.shape_cast %18 : vector<128xf32> to vector<1x128xf32>
    %20 = vector.broadcast %19 : vector<1x128xf32> to vector<8x128xf32>
    %21 = arith.addf %16, %20 : vector<8x128xf32>
    %cst_10 = arith.constant 0.000000e+00 : f32
    %22 = vector.broadcast %cst_10 : f32 to vector<8x128xf32>
    %23 = arith.cmpf oge, %21, %22 : vector<8x128xf32>
    %cst_11 = arith.constant 2.000000e-01 : f32
    %24 = vector.broadcast %cst_11 : f32 to vector<8x128xf32>
    %25 = arith.mulf %24, %21 : vector<8x128xf32>
    %26 = arith.select %23, %21, %25 : vector<8x128xi1>, vector<8x128xf32>
    %27 = arith.truncf %26 : vector<8x128xf32> to vector<8x128xbf16>
    %c0_12 = arith.constant 0 : index
    %c0_13 = arith.constant 0 : index
    %28 = vector.load %arg5[%c0_12, %c0_13] : memref<128x128xbf16, #tpu.memory_space<vmem>>, vector<128x128xbf16>
    %cst_14 = arith.constant dense<0.000000e+00> : vector<8x128xf32>
    %29 = tpu.matmul %27, %28, %cst_14 {dimension_numbers = #tpu.dot_dimension_numbers<[1], [0], [0], [1], [0, 0, 1, 1], [], []>} : vector<8x128xbf16>, vector<128x128xbf16>, vector<8x128xf32> -> vector<8x128xf32>
    %30 = vector.extract_strided_slice %0 {offsets = [2, 0], sizes = [1, 128], strides = [1, 1]} : vector<4x128xf32> to vector<1x128xf32>
    %31 = vector.shape_cast %30 : vector<1x128xf32> to vector<128xf32>
    %32 = vector.shape_cast %31 : vector<128xf32> to vector<1x128xf32>
    %33 = vector.broadcast %32 : vector<1x128xf32> to vector<8x128xf32>
    %34 = arith.addf %29, %33 : vector<8x128xf32>
    %cst_15 = arith.constant 0.000000e+00 : f32
    %35 = vector.broadcast %cst_15 : f32 to vector<8x128xf32>
    %36 = arith.cmpf oge, %34, %35 : vector<8x128xf32>
    %cst_16 = arith.constant 2.000000e-01 : f32
    %37 = vector.broadcast %cst_16 : f32 to vector<8x128xf32>
    %38 = arith.mulf %37, %34 : vector<8x128xf32>
    %39 = arith.select %36, %34, %38 : vector<8x128xi1>, vector<8x128xf32>
    %40 = arith.truncf %39 : vector<8x128xf32> to vector<8x128xbf16>
    %c0_17 = arith.constant 0 : index
    %c0_18 = arith.constant 0 : index
    %41 = vector.load %arg6[%c0_17, %c0_18] : memref<128x128xbf16, #tpu.memory_space<vmem>>, vector<128x128xbf16>
    %cst_19 = arith.constant dense<0.000000e+00> : vector<8x128xf32>
    %42 = tpu.matmul %40, %41, %cst_19 {dimension_numbers = #tpu.dot_dimension_numbers<[1], [0], [0], [1], [0, 0, 1, 1], [], []>} : vector<8x128xbf16>, vector<128x128xbf16>, vector<8x128xf32> -> vector<8x128xf32>
    %43 = vector.extract_strided_slice %0 {offsets = [3, 0], sizes = [1, 128], strides = [1, 1]} : vector<4x128xf32> to vector<1x128xf32>
    %44 = vector.shape_cast %43 : vector<1x128xf32> to vector<128xf32>
    %45 = vector.shape_cast %44 : vector<128xf32> to vector<1x128xf32>
    %46 = vector.broadcast %45 : vector<1x128xf32> to vector<8x128xf32>
    %47 = arith.addf %42, %46 : vector<8x128xf32>
    %c0_20 = arith.constant 0 : index
    %c0_21 = arith.constant 0 : index
    %48 = vector.load %arg7[%c0_20, %c0_21] : memref<8x128xf32, #tpu.memory_space<vmem>>, vector<8x128xf32>
    tpu.vector_store %arg7[%c0_20, %c0_21], %47 {strides = array<i32>} : memref<8x128xf32, #tpu.memory_space<vmem>>, vector<8x128xf32>,
    return
  }
  func.func @transform_0(%arg0: i32) -> (i32, i32) {
    %c0_i32 = arith.constant 0 : i32
    %c0_i32_0 = arith.constant 0 : i32
    return %arg0, %c0_i32 : i32, i32
  }
  func.func @transform_1(%arg0: i32) -> (i32, i32) {
    %c0_i32 = arith.constant 0 : i32
    %c0_i32_0 = arith.constant 0 : i32
    %c0_i32_1 = arith.constant 0 : i32
    return %c0_i32, %c0_i32_0 : i32, i32
  }
  func.func @transform_2(%arg0: i32) -> (i32, i32) {
    %c0_i32 = arith.constant 0 : i32
    %c0_i32_0 = arith.constant 0 : i32
    %c0_i32_1 = arith.constant 0 : i32
    return %c0_i32, %c0_i32_0 : i32, i32
  }
  func.func @transform_3(%arg0: i32) -> (i32, i32) {
    %c0_i32 = arith.constant 0 : i32
    %c0_i32_0 = arith.constant 0 : i32
    %c0_i32_1 = arith.constant 0 : i32
    return %c0_i32, %c0_i32_0 : i32, i32
  }
  func.func @transform_4(%arg0: i32) -> (i32, i32) {
    %c0_i32 = arith.constant 0 : i32
    %c0_i32_0 = arith.constant 0 : i32
    %c0_i32_1 = arith.constant 0 : i32
    return %c0_i32, %c0_i32_0 : i32, i32
  }
  func.func @transform_5(%arg0: i32) -> (i32, i32) {
    %c0_i32 = arith.constant 0 : i32
    %c0_i32_0 = arith.constant 0 : i32
    %c0_i32_1 = arith.constant 0 : i32
    return %c0_i32, %c0_i32_0 : i32, i32
  }
  func.func @transform_6(%arg0: i32) -> (i32, i32) {
    %c0_i32 = arith.constant 0 : i32
    %c0_i32_0 = arith.constant 0 : i32
    return %arg0, %c0_i32 : i32, i32
  }
}

module attributes {stable_mosaic.version = 11 : i64} {
  func.func @_mlp_fused_kernel(%arg0: i32, %arg1: memref<8x128xbf16, #tpu.memory_space<vmem>>, %arg2: memref<4x128xf32, #tpu.memory_space<vmem>>, %arg3: memref<128x128xbf16, #tpu.memory_space<vmem>>, %arg4: memref<128x128xbf16, #tpu.memory_space<vmem>>, %arg5: memref<128x128xbf16, #tpu.memory_space<vmem>>, %arg6: memref<128x128xbf16, #tpu.memory_space<vmem>>, %arg7: memref<8x128xf32, #tpu.memory_space<vmem>>) attributes {dimension_semantics = [#tpu.dimension_semantics<parallel>], iteration_bounds = array<i64: 1>, scalar_prefetch = 0 : i64, scratch_operands = 0 : i64, tpu.core_type = #tpu.core_type<tc>, window_params = [{transform_indices = @transform_0, window_bounds = array<i64: 8, 128>}, {pipeline_mode = #tpu.pipeline_mode<synchronous>, transform_indices = @transform_1, window_bounds = array<i64: 4, 128>}, {pipeline_mode = #tpu.pipeline_mode<synchronous>, transform_indices = @transform_2, window_bounds = array<i64: 128, 128>}, {pipeline_mode = #tpu.pipeline_mode<synchronous>, transform_indices = @transform_3, window_bounds = array<i64: 128, 128>}, {pipeline_mode = #tpu.pipeline_mode<synchronous>, transform_indices = @transform_4, window_bounds = array<i64: 128, 128>}, {pipeline_mode = #tpu.pipeline_mode<synchronous>, transform_indices = @transform_5, window_bounds = array<i64: 128, 128>}, {transform_indices = @transform_6, window_bounds = array<i64: 8, 128>}]} {
    %c0 = arith.constant 0 : index
    %c0_0 = arith.constant 0 : index
    %0 = vector.load %arg2[%c0, %c0_0] : memref<4x128xf32, #tpu.memory_space<vmem>>, vector<4x128xf32>
    %c0_1 = arith.constant 0 : index
    %c0_2 = arith.constant 0 : index
    %1 = vector.load %arg1[%c0_1, %c0_2] : memref<8x128xbf16, #tpu.memory_space<vmem>>, vector<8x128xbf16>
    %c0_3 = arith.constant 0 : index
    %c0_4 = arith.constant 0 : index
    %2 = vector.load %arg3[%c0_3, %c0_4] : memref<128x128xbf16, #tpu.memory_space<vmem>>, vector<128x128xbf16>
    %cst = arith.constant dense<0.000000e+00> : vector<8x128xf32>
    %3 = tpu.matmul %1, %2, %cst {dimension_numbers = #tpu.dot_dimension_numbers<[1], [0], [0], [1], [0, 0, 1, 1], [], []>} : vector<8x128xbf16>, vector<128x128xbf16>, vector<8x128xf32> -> vector<8x128xf32>
    %4 = vector.extract_strided_slice %0 {offsets = [0, 0], sizes = [1, 128], strides = [1, 1]} : vector<4x128xf32> to vector<1x128xf32>
    %5 = vector.shape_cast %4 : vector<1x128xf32> to vector<128xf32>
    %6 = vector.shape_cast %5 : vector<128xf32> to vector<1x128xf32>
    %7 = vector.broadcast %6 : vector<1x128xf32> to vector<8x128xf32>
    %8 = arith.addf %3, %7 : vector<8x128xf32>
    %cst_5 = arith.constant 0.000000e+00 : f32
    %9 = vector.broadcast %cst_5 : f32 to vector<8x128xf32>
    %10 = arith.cmpf oge, %8, %9 : vector<8x128xf32>
    %cst_6 = arith.constant 2.000000e-01 : f32
    %11 = vector.broadcast %cst_6 : f32 to vector<8x128xf32>
    %12 = arith.mulf %11, %8 : vector<8x128xf32>
    %13 = arith.select %10, %8, %12 : vector<8x128xi1>, vector<8x128xf32>
    %14 = arith.truncf %13 : vector<8x128xf32> to vector<8x128xbf16>
    %c0_7 = arith.constant 0 : index
    %c0_8 = arith.constant 0 : index
    %15 = vector.load %arg4[%c0_7, %c0_8] : memref<128x128xbf16, #tpu.memory_space<vmem>>, vector<128x128xbf16>
    %cst_9 = arith.constant dense<0.000000e+00> : vector<8x128xf32>
    %16 = tpu.matmul %14, %15, %cst_9 {dimension_numbers = #tpu.dot_dimension_numbers<[1], [0], [0], [1], [0, 0, 1, 1], [], []>} : vector<8x128xbf16>, vector<128x128xbf16>, vector<8x128xf32> -> vector<8x128xf32>
    %17 = vector.extract_strided_slice %0 {offsets = [1, 0], sizes = [1, 128], strides = [1, 1]} : vector<4x128xf32> to vector<1x128xf32>
    %18 = vector.shape_cast %17 : vector<1x128xf32> to vector<128xf32>
    %19 = vector.shape_cast %18 : vector<128xf32> to vector<1x128xf32>
    %20 = vector.broadcast %19 : vector<1x128xf32> to vector<8x128xf32>
    %21 = arith.addf %16, %20 : vector<8x128xf32>
    %cst_10 = arith.constant 0.000000e+00 : f32
    %22 = vector.broadcast %cst_10 : f32 to vector<8x128xf32>
    %23 = arith.cmpf oge, %21, %22 : vector<8x128xf32>
    %cst_11 = arith.constant 2.000000e-01 : f32
    %24 = vector.broadcast %cst_11 : f32 to vector<8x128xf32>
    %25 = arith.mulf %24, %21 : vector<8x128xf32>
    %26 = arith.select %23, %21, %25 : vector<8x128xi1>, vector<8x128xf32>
    %27 = arith.truncf %26 : vector<8x128xf32> to vector<8x128xbf16>
    %c0_12 = arith.constant 0 : index
    %c0_13 = arith.constant 0 : index
    %28 = vector.load %arg5[%c0_12, %c0_13] : memref<128x128xbf16, #tpu.memory_space<vmem>>, vector<128x128xbf16>
    %cst_14 = arith.constant dense<0.000000e+00> : vector<8x128xf32>
    %29 = tpu.matmul %27, %28, %cst_14 {dimension_numbers = #tpu.dot_dimension_numbers<[1], [0], [0], [1], [0, 0, 1, 1], [], []>} : vector<8x128xbf16>, vector<128x128xbf16>, vector<8x128xf32> -> vector<8x128xf32>
    %30 = vector.extract_strided_slice %0 {offsets = [2, 0], sizes = [1, 128], strides = [1, 1]} : vector<4x128xf32> to vector<1x128xf32>
    %31 = vector.shape_cast %30 : vector<1x128xf32> to vector<128xf32>
    %32 = vector.shape_cast %31 : vector<128xf32> to vector<1x128xf32>
    %33 = vector.broadcast %32 : vector<1x128xf32> to vector<8x128xf32>
    %34 = arith.addf %29, %33 : vector<8x128xf32>
    %cst_15 = arith.constant 0.000000e+00 : f32
    %35 = vector.broadcast %cst_15 : f32 to vector<8x128xf32>
    %36 = arith.cmpf oge, %34, %35 : vector<8x128xf32>
    %cst_16 = arith.constant 2.000000e-01 : f32
    %37 = vector.broadcast %cst_16 : f32 to vector<8x128xf32>
    %38 = arith.mulf %37, %34 : vector<8x128xf32>
    %39 = arith.select %36, %34, %38 : vector<8x128xi1>, vector<8x128xf32>
    %40 = arith.truncf %39 : vector<8x128xf32> to vector<8x128xbf16>
    %c0_17 = arith.constant 0 : index
    %c0_18 = arith.constant 0 : index
    %41 = vector.load %arg6[%c0_17, %c0_18] : memref<128x128xbf16, #tpu.memory_space<vmem>>, vector<128x128xbf16>
    %cst_19 = arith.constant dense<0.000000e+00> : vector<8x128xf32>
    %42 = tpu.matmul %40, %41, %cst_19 {dimension_numbers = #tpu.dot_dimension_numbers<[1], [0], [0], [1], [0, 0, 1, 1], [], []>} : vector<8x128xbf16>, vector<128x128xbf16>, vector<8x128xf32> -> vector<8x128xf32>
    %43 = vector.extract_strided_slice %0 {offsets = [3, 0], sizes = [1, 128], strides = [1, 1]} : vector<4x128xf32> to vector<1x128xf32>
    %44 = vector.shape_cast %43 : vector<1x128xf32> to vector<128xf32>
    %45 = vector.shape_cast %44 : vector<128xf32> to vector<1x128xf32>
    %46 = vector.broadcast %45 : vector<1x128xf32> to vector<8x128xf32>
    %47 = arith.addf %42, %46 : vector<8x128xf32>
    %c0_20 = arith.constant 0 : index
    %c0_21 = arith.constant 0 : index
    %48 = vector.load %arg7[%c0_20, %c0_21] : memref<8x128xf32, #tpu.memory_space<vmem>>, vector<8x128xf32>
    tpu.vector_store %arg7[%c0_20, %c0_21], %47 {strides = array<i32>} : memref<8x128xf32, #tpu.memory_space<vmem>>, vector<8x128xf32>,
    return
  }
  func.func @transform_0(%arg0: i32) -> (i32, i32) {
    %c0_i32 = arith.constant 0 : i32
    %c0_i32_0 = arith.constant 0 : i32
    return %arg0, %c0_i32 : i32, i32
  }
  func.func @transform_1(%arg0: i32) -> (i32, i32) {
    %c0_i32 = arith.constant 0 : i32
    %c0_i32_0 = arith.constant 0 : i32
    %c0_i32_1 = arith.constant 0 : i32
    return %c0_i32, %c0_i32_0 : i32, i32
  }
  func.func @transform_2(%arg0: i32) -> (i32, i32) {
    %c0_i32 = arith.constant 0 : i32
    %c0_i32_0 = arith.constant 0 : i32
    %c0_i32_1 = arith.constant 0 : i32
    return %c0_i32, %c0_i32_0 : i32, i32
  }
  func.func @transform_3(%arg0: i32) -> (i32, i32) {
    %c0_i32 = arith.constant 0 : i32
    %c0_i32_0 = arith.constant 0 : i32
    %c0_i32_1 = arith.constant 0 : i32
    return %c0_i32, %c0_i32_0 : i32, i32
  }
  func.func @transform_4(%arg0: i32) -> (i32, i32) {
    %c0_i32 = arith.constant 0 : i32
    %c0_i32_0 = arith.constant 0 : i32
    %c0_i32_1 = arith.constant 0 : i32
    return %c0_i32, %c0_i32_0 : i32, i32
  }
  func.func @transform_5(%arg0: i32) -> (i32, i32) {
    %c0_i32 = arith.constant 0 : i32
    %c0_i32_0 = arith.constant 0 : i32
    %c0_i32_1 = arith.constant 0 : i32
    return %c0_i32, %c0_i32_0 : i32, i32
  }
  func.func @transform_6(%arg0: i32) -> (i32, i32) {
    %c0_i32 = arith.constant 0 : i32
    %c0_i32_0 = arith.constant 0 : i32
    return %arg0, %c0_i32 : i32, i32
  }
}

</mosaic_0001>

<bundles_post_ra>
// kernel: tpu_custom_call.1
= control target key start
LH: loop header
LB: loop body
LE: loop exit
PB: predicated region body
PF: predicated region fallthrough
CT: control target
= control target key end

     0   :  { %11 = vsyncpa [#allocation3], 0  ;;  %s873_s0 = inlined_call_operand.hbm [shape: bf16[8,128], index: 0, kind: input, shape index: {}]   ;;  %s874_s1 = inlined_call_operand.hbm [shape: f32[4,128], index: 1, kind: input, shape index: {}]   ;;  %s875_s2 = inlined_call_operand.hbm [shape: bf16[128,128], index: 2, kind: input, shape index: {}]   ;;  %s876_s3 = inlined_call_operand.hbm [shape: bf16[128,128], index: 3, kind: input, shape index: {}]   ;;  %s877_s4 = inlined_call_operand.hbm [shape: bf16[128,128], index: 4, kind: input, shape index: {}]   ;;  %s878_s5 = inlined_call_operand.hbm [shape: bf16[128,128], index: 5, kind: input, shape index: {}]   ;;  %s879_s6 = inlined_call_operand.hbm [shape: f32[8,128], index: 6, kind: output, shape index: {}]  }
   0x1   :  { %12 = vsyncpa [#allocation6], 0 }
   0x2   :  { %13 = vsyncpa [#allocation9], 0 }
   0x3   :  { %14 = vsyncpa [#allocation12], 0  ;;  %s32_s23 = sshll.u32 %s874_s1, 4  ;;  %s33_s23 = int_to_ptr.hbm [resolvable:$true] %s32_s23 }
   0x4   :  { %15 = vsyncpa [#allocation4], 0  ;;  %s808_s24 = smov [#allocation5]   ;;  %s55_s28 = sshll.u32 %s876_s3, 4  ;;  %s56_s28 = int_to_ptr.hbm [resolvable:$true] %s55_s28 }
   0x5   :  { %s34_s25 = sshll.u32 %s808_s24, 4  ;;  %s809_s29 = smov [#allocation8]   ;;  %s35_s25 = int_to_ptr.vmem [resolvable:$true] %s34_s25 }
   0x6   :  { %37 = dma.hbm_to_vmem [thread:$0]  %s33_s23, 64, %s35_s25, [#allocation6]  }
   0x7   :  { %s57_s30 = sshll.u32 %s809_s29, 4  ;;  %s21_s9 = sshll.u32 %s873_s0, 4  ;;  %s58_s30 = int_to_ptr.vmem [resolvable:$true] %s57_s30  ;;  %s22_s9 = int_to_ptr.hbm [resolvable:$true] %s21_s9 }
   0x8   :  { %s810_s1 = smov 64   ;;  %s811_s10 = smov 4  }
   0x9   :  { %63 = dma.hbm_to_vmem [thread:$0]  %s56_s28, 1024, %s58_s30, [#allocation9], %s810_s1, %s810_s1, %s811_s10  }
   0xa   :  { %s42_s13 = sshll.u32 %s875_s2, 4  ;;  %s812_s14 = smov [#allocation2]   ;;  %s43_s13 = int_to_ptr.hbm [resolvable:$true] %s42_s13 }
   0xb   :  { %s23_s15 = sshll.u32 %s812_s14, 4  ;;  %s813_s3 = smov [#allocation7]   ;;  %s24_s15 = int_to_ptr.vmem [resolvable:$true] %s23_s15 }
   0xc   :  { %26 = dma.hbm_to_vmem [thread:$0]  %s22_s9, 64, %s24_s15, [#allocation3]  }
   0xd   :  { %s44_s16 = sshll.u32 %s813_s3, 4  ;;  %s68_s0 = sshll.u32 %s877_s4, 4  ;;  %s45_s16 = int_to_ptr.vmem [resolvable:$true] %s44_s16  ;;  %s69_s0 = int_to_ptr.hbm [resolvable:$true] %s68_s0 }
   0xe   :  { %50 = dma.hbm_to_vmem [thread:$0]  %s43_s13, 1024, %s45_s16, [#allocation6], %s810_s1, %s810_s1, %s811_s10  }
   0xf   :  { %s81_s21 = sshll.u32 %s878_s5, 4  ;;  %s814_s22 = smov [#allocation10]   ;;  %s82_s21 = int_to_ptr.hbm [resolvable:$true] %s81_s21 }
  0x10   :  { %s70_s2 = sshll.u32 %s814_s22, 4  ;;  %s815_s23 = smov [#allocation11]   ;;  %s71_s2 = int_to_ptr.vmem [resolvable:$true] %s70_s2 }
  0x11   :  { %76 = dma.hbm_to_vmem [thread:$0]  %s69_s0, 1024, %s71_s2, [#allocation9], %s810_s1, %s810_s1, %s811_s10  }
  0x12   :  { %s83_s24 = sshll.u32 %s815_s23, 4  ;;  %s84_s24 = int_to_ptr.vmem [resolvable:$true] %s83_s24 }
  0x13   :  { %89 = dma.hbm_to_vmem [thread:$0]  %s82_s21, 1024, %s84_s24, [#allocation12], %s810_s1, %s810_s1, %s811_s10  }
  0x14   :  { %798 = dma.done.wait [#allocation3], 64  }
  0x15   :  { %799 = vsyncadd [#allocation3], 4294967232 }
  0x16   :  { %800 = dma.done.wait [#allocation6], 1088  }
  0x17   :  { %801 = vsyncadd [#allocation6], 4294966208 }
  0x18   :  { %802 = dma.done.wait [#allocation9], 2048  }
  0x19   :  { %803 = vsyncadd [#allocation9], 4294965248 }
  0x1a   :  { %804 = dma.done.wait [#allocation12], 1024  }
  0x1b   :  { %805 = vsyncadd [#allocation12], 4294966272  ;;  %v596_v0 = vld [vmem:[#allocation7 + $0x38] sm:$0xff]  ;;  %v595_v1 = vld [vmem:[#allocation7 + $0x30] sm:$0xff]  ;;  %s816_s4 = smov [#allocation13]   ;;  %s448_s27 = sshll.u32 %s879_s6, 4  ;;  %s449_s27 = int_to_ptr.hbm [resolvable:$true] %s448_s27 }
  0x1c   :  { %181 = vmatpush.bf16.msra.mxu0 %v596_v0  ;;  %v604_v2 = vld [vmem:[#allocation8 + $0x38] sm:$0xff]  ;;  %v603_v3 = vld [vmem:[#allocation8 + $0x30] sm:$0xff]  ;;  %v594_v4 = vld [vmem:[#allocation7 + $0x28] sm:$0xff]  ;;  %s446_s5 = sshll.u32 %s816_s4, 4  ;;  %s447_s5 = int_to_ptr.vmem [resolvable:$true] %s446_s5 }
  0x1d   :  { %263 = vmatpush.bf16.msra.mxu1 %v604_v2  ;;  %v602_v5 = vld [vmem:[#allocation8 + $0x28] sm:$0xff]  ;;  %v593_v6 = vld [vmem:[#allocation7 + $0x20] sm:$0xff]  ;;  %v592_v8 = vld [vmem:[#allocation7 + $0x18] sm:$0xff] }
  0x1e   :  { %v601_v7 = vld [vmem:[#allocation8 + $0x20] sm:$0xff]  ;;  %v600_v9 = vld [vmem:[#allocation8 + $0x18] sm:$0xff]  ;;  %v591_v10 = vld [vmem:[#allocation7 + $0x10] sm:$0xff] }
  0x1f   :  { %v599_v11 = vld [vmem:[#allocation8 + $0x10] sm:$0xff]  ;;  %v590_v12 = vld [vmem:[#allocation7 + $0x8] sm:$0xff]  ;;  %v589_v13 = vld [vmem:[#allocation7] sm:$0xff] }
  0x20   :  { %182 = vmatpush.bf16.msra.mxu0 %v595_v1  ;;  %v115_v14 = vld [vmem:[#allocation2] sm:$0xf]  ;;  %v598_v15 = vld [vmem:[#allocation8 + $0x8] sm:$0xff]  ;;  %v597_v16 = vld [vmem:[#allocation8] sm:$0xff] }
  0x21   :  { %264 = vmatpush.bf16.msra.mxu1 %v603_v3  ;;  %v612_v17 = vld [vmem:[#allocation10 + $0x38] sm:$0xff]  ;;  %v611_v18 = vld [vmem:[#allocation10 + $0x30] sm:$0xff]  ;;  %v610_v19 = vld [vmem:[#allocation10 + $0x28] sm:$0xff] }
  0x22   :  { %345 = vmatpush.bf16.msra.mxu2 %v612_v17  ;;  %v609_v20 = vld [vmem:[#allocation10 + $0x20] sm:$0xff]  ;;  %v608_v21 = vld [vmem:[#allocation10 + $0x18] sm:$0xff]  ;;  %v607_v23 = vld [vmem:[#allocation10 + $0x10] sm:$0xff] }
  0x23   :  { %v114_v22 = vld [vmem:[#allocation5] sm:$0xf]  ;;  %v606_v31 = vld [vmem:[#allocation10 + $0x8] sm:$0xff]  ;;  %v605_v32 = vld [vmem:[#allocation10] sm:$0xff] }
  0x24   :  { %183 = vmatpush.bf16.msra.mxu0 %v594_v4  ;;  %v132_v24 = vperm.slane %v114_v22, 0  ;;  %v620_v33 = vld [vmem:[#allocation11 + $0x38] sm:$0xff]  ;;  %v619_v34 = vld [vmem:[#allocation11 + $0x30] sm:$0xff]  ;;  %v618_v35 = vld [vmem:[#allocation11 + $0x28] sm:$0xff]  ;;  %v214_v39 = vperm.slane %v114_v22, 1  ;;  %v296_v48 = vperm.slane %v114_v22, 2 }
  0x25   :  { %265 = vmatpush.bf16.msra.mxu1 %v602_v5  ;;  %427 = vmatpush.bf16.msra.mxu3 %v620_v33  ;;  %v617_v36 = vld [vmem:[#allocation11 + $0x20] sm:$0xff]  ;;  %v616_v37 = vld [vmem:[#allocation11 + $0x18] sm:$0xff]  ;;  %v615_v38 = vld [vmem:[#allocation11 + $0x10] sm:$0xff]  ;;  %v378_v55 = vperm.slane %v114_v22, 3 }
  0x26   :  { %346 = vmatpush.bf16.msra.mxu2 %v611_v18  ;;  %v614_v46 = vld [vmem:[#allocation11 + $0x8] sm:$0xff]  ;;  %v613_v47 = vld [vmem:[#allocation11] sm:$0xff] }
  0x28   :  { %184 = vmatpush.bf16.msra.mxu0 %v593_v6 }
  0x29   :  { %266 = vmatpush.bf16.msra.mxu1 %v601_v7  ;;  %428 = vmatpush.bf16.msra.mxu3 %v619_v34 }
  0x2a   :  { %347 = vmatpush.bf16.msra.mxu2 %v610_v19 }
  0x2c   :  { %185 = vmatpush.bf16.msra.mxu0 %v592_v8 }
  0x2d   :  { %267 = vmatpush.bf16.msra.mxu1 %v600_v9  ;;  %429 = vmatpush.bf16.msra.mxu3 %v618_v35 }
  0x2e   :  { %348 = vmatpush.bf16.msra.mxu2 %v609_v20 }
  0x30   :  { %186 = vmatpush.bf16.msra.mxu0 %v591_v10 }
  0x31   :  { %268 = vmatpush.bf16.msra.mxu1 %v599_v11  ;;  %430 = vmatpush.bf16.msra.mxu3 %v617_v36 }
  0x32   :  { %349 = vmatpush.bf16.msra.mxu2 %v608_v21 }
  0x34   :  { %187 = vmatpush.bf16.msra.mxu0 %v590_v12 }
  0x35   :  { %269 = vmatpush.bf16.msra.mxu1 %v598_v15  ;;  %431 = vmatpush.bf16.msra.mxu3 %v616_v37 }
  0x36   :  { %350 = vmatpush.bf16.msra.mxu2 %v607_v23 }
  0x38   :  { %188 = vmatpush.bf16.msra.mxu0 %v589_v13 }
  0x39   :  { %270 = vmatpush.bf16.msra.mxu1 %v597_v16  ;;  %432 = vmatpush.bf16.msra.mxu3 %v615_v38 }
  0x3a   :  { %351 = vmatpush.bf16.msra.mxu2 %v606_v31 }
  0x3b   :  { %189 = vmatmul.bf16.vlgmr.msra.gmra.mxu0 %v115_v14 }
  0x3d   :  { %433 = vmatpush.bf16.msra.mxu3 %v614_v46 }
  0x3e   :  { %352 = vmatpush.bf16.msra.mxu2 %v605_v32 }
  0x41   :  { %434 = vmatpush.bf16.msra.mxu3 %v613_v47 }
  0xb8   :  { %v190_v25 = vpop.f32.mrf.mxu0 }
  0xb9   :  { %v191_v26 = vadd.f32 %v190_v25, %v132_v24 }
  0xbb   :  { %v195_v27 = vmul.f32 0.2, %v191_v26  ;;  %vm194_vm0 = vcmp.ge.f32.partialorder %v191_v26, 0.0 }
  0xbd   :  { %v196_v28 = vsel %vm194_vm0, %v191_v26, %v195_v27 }
  0xbe   :  { %v197_v29 = vpack.c.bf16 %v196_v28, %v196_v28 }
  0xc0   :  { %v192_v30 = vpop.f32.mrf.mxu0  ;;  %271 = vmatmul.bf16.vlgmr.msra.gmra.mxu1 %v197_v29 }
 0x13d   :  { %v272_v40 = vpop.f32.mrf.mxu1 }
 0x13e   :  { %v273_v41 = vadd.f32 %v272_v40, %v214_v39 }
 0x140   :  { %v277_v42 = vmul.f32 0.2, %v273_v41  ;;  %vm276_vm1 = vcmp.ge.f32.partialorder %v273_v41, 0.0 }
 0x142   :  { %v278_v43 = vsel %vm276_vm1, %v273_v41, %v277_v42 }
 0x143   :  { %v279_v44 = vpack.c.bf16 %v278_v43, %v278_v43 }
 0x145   :  { %v274_v45 = vpop.f32.mrf.mxu1  ;;  %353 = vmatmul.bf16.vlgmr.msra.gmra.mxu2 %v279_v44 }
 0x1c8   :  { %v354_v49 = vpop.f32.mrf.mxu2 }
 0x1c9   :  { %v355_v50 = vadd.f32 %v354_v49, %v296_v48 }
 0x1cb   :  { %v359_v51 = vmul.f32 0.2, %v355_v50  ;;  %vm358_vm2 = vcmp.ge.f32.partialorder %v355_v50, 0.0 }
 0x1cd   :  { %v360_v52 = vsel %vm358_vm2, %v355_v50, %v359_v51 }
 0x1ce   :  { %v361_v53 = vpack.c.bf16 %v360_v52, %v360_v52 }
 0x1d0   :  { %v356_v54 = vpop.f32.mrf.mxu2  ;;  %435 = vmatmul.bf16.vlgmr.msra.gmra.mxu3 %v361_v53 }
 0x253   :  { %v436_v56 = vpop.f32.mrf.mxu3 }
 0x254   :  { %v437_v57 = vadd.f32 %v436_v56, %v378_v55 }
 0x256   :  { %440 = vst [vmem:[#allocation13] sm:$0xff] %v437_v57 }
 0x257   :  { %451 = dma.vmem_to_hbm [thread:$0]  %s447_s5, 128, %s449_s27, [#allocation4]  }
 0x25b   :  { %v438_v58 = vpop.f32.mrf.mxu3 }
 0x25c   :  { %806 = dma.done.wait [#allocation4], 128  }
 0x25d   :  { %807 = vsyncadd [#allocation4], 4294967168 }
 0x25e   :  { %456 = vsyncpa [#allocation3], 1 }
 0x25f   :  { %457 = vsyncpa [#allocation6], 1 }
 0x260   :  { %458 = vsyncpa [#allocation9], 1 }
 0x261   :  { %459 = vsyncpa [#allocation12], 1 }
 0x262   :  { %460 = vsyncpa [#allocation4], 1 }

// kernel: tpu_custom_call.1
= control target key start
LH: loop header
LB: loop body
LE: loop exit
PB: predicated region body
PF: predicated region fallthrough
CT: control target
= control target key end

     0   :  { %11 = vsyncpa [#allocation3], 0  ;;  %s873_s0 = inlined_call_operand.hbm [shape: bf16[8,128], index: 0, kind: input, shape index: {}]   ;;  %s874_s1 = inlined_call_operand.hbm [shape: f32[4,128], index: 1, kind: input, shape index: {}]   ;;  %s875_s2 = inlined_call_operand.hbm [shape: bf16[128,128], index: 2, kind: input, shape index: {}]   ;;  %s876_s3 = inlined_call_operand.hbm [shape: bf16[128,128], index: 3, kind: input, shape index: {}]   ;;  %s877_s4 = inlined_call_operand.hbm [shape: bf16[128,128], index: 4, kind: input, shape index: {}]   ;;  %s878_s5 = inlined_call_operand.hbm [shape: bf16[128,128], index: 5, kind: input, shape index: {}]   ;;  %s879_s6 = inlined_call_operand.hbm [shape: f32[8,128], index: 6, kind: output, shape index: {}]  }
   0x1   :  { %12 = vsyncpa [#allocation6], 0 }
   0x2   :  { %13 = vsyncpa [#allocation9], 0 }
   0x3   :  { %14 = vsyncpa [#allocation12], 0  ;;  %s32_s23 = sshll.u32 %s874_s1, 4  ;;  %s33_s23 = int_to_ptr.hbm [resolvable:$true] %s32_s23 }
   0x4   :  { %15 = vsyncpa [#allocation4], 0  ;;  %s808_s24 = smov [#allocation5]   ;;  %s55_s28 = sshll.u32 %s876_s3, 4  ;;  %s56_s28 = int_to_ptr.hbm [resolvable:$true] %s55_s28 }
   0x5   :  { %s34_s25 = sshll.u32 %s808_s24, 4  ;;  %s809_s29 = smov [#allocation8]   ;;  %s35_s25 = int_to_ptr.vmem [resolvable:$true] %s34_s25 }
   0x6   :  { %37 = dma.hbm_to_vmem [thread:$0]  %s33_s23, 64, %s35_s25, [#allocation6]  }
   0x7   :  { %s57_s30 = sshll.u32 %s809_s29, 4  ;;  %s21_s9 = sshll.u32 %s873_s0, 4  ;;  %s58_s30 = int_to_ptr.vmem [resolvable:$true] %s57_s30  ;;  %s22_s9 = int_to_ptr.hbm [resolvable:$true] %s21_s9 }
   0x8   :  { %s810_s1 = smov 64   ;;  %s811_s10 = smov 4  }
   0x9   :  { %63 = dma.hbm_to_vmem [thread:$0]  %s56_s28, 1024, %s58_s30, [#allocation9], %s810_s1, %s810_s1, %s811_s10  }
   0xa   :  { %s42_s13 = sshll.u32 %s875_s2, 4  ;;  %s812_s14 = smov [#allocation2]   ;;  %s43_s13 = int_to_ptr.hbm [resolvable:$true] %s42_s13 }
   0xb   :  { %s23_s15 = sshll.u32 %s812_s14, 4  ;;  %s813_s3 = smov [#allocation7]   ;;  %s24_s15 = int_to_ptr.vmem [resolvable:$true] %s23_s15 }
   0xc   :  { %26 = dma.hbm_to_vmem [thread:$0]  %s22_s9, 64, %s24_s15, [#allocation3]  }
   0xd   :  { %s44_s16 = sshll.u32 %s813_s3, 4  ;;  %s68_s0 = sshll.u32 %s877_s4, 4  ;;  %s45_s16 = int_to_ptr.vmem [resolvable:$true] %s44_s16  ;;  %s69_s0 = int_to_ptr.hbm [resolvable:$true] %s68_s0 }
   0xe   :  { %50 = dma.hbm_to_vmem [thread:$0]  %s43_s13, 1024, %s45_s16, [#allocation6], %s810_s1, %s810_s1, %s811_s10  }
   0xf   :  { %s81_s21 = sshll.u32 %s878_s5, 4  ;;  %s814_s22 = smov [#allocation10]   ;;  %s82_s21 = int_to_ptr.hbm [resolvable:$true] %s81_s21 }
  0x10   :  { %s70_s2 = sshll.u32 %s814_s22, 4  ;;  %s815_s23 = smov [#allocation11]   ;;  %s71_s2 = int_to_ptr.vmem [resolvable:$true] %s70_s2 }
  0x11   :  { %76 = dma.hbm_to_vmem [thread:$0]  %s69_s0, 1024, %s71_s2, [#allocation9], %s810_s1, %s810_s1, %s811_s10  }
  0x12   :  { %s83_s24 = sshll.u32 %s815_s23, 4  ;;  %s84_s24 = int_to_ptr.vmem [resolvable:$true] %s83_s24 }
  0x13   :  { %89 = dma.hbm_to_vmem [thread:$0]  %s82_s21, 1024, %s84_s24, [#allocation12], %s810_s1, %s810_s1, %s811_s10  }
  0x14   :  { %798 = dma.done.wait [#allocation3], 64  }
  0x15   :  { %799 = vsyncadd [#allocation3], 4294967232 }
  0x16   :  { %800 = dma.done.wait [#allocation6], 1088  }
  0x17   :  { %801 = vsyncadd [#allocation6], 4294966208 }
  0x18   :  { %802 = dma.done.wait [#allocation9], 2048  }
  0x19   :  { %803 = vsyncadd [#allocation9], 4294965248 }
  0x1a   :  { %804 = dma.done.wait [#allocation12], 1024  }
  0x1b   :  { %805 = vsyncadd [#allocation12], 4294966272  ;;  %v596_v0 = vld [vmem:[#allocation7 + $0x38] sm:$0xff]  ;;  %v595_v1 = vld [vmem:[#allocation7 + $0x30] sm:$0xff]  ;;  %s816_s4 = smov [#allocation13]   ;;  %s448_s27 = sshll.u32 %s879_s6, 4  ;;  %s449_s27 = int_to_ptr.hbm [resolvable:$true] %s448_s27 }
  0x1c   :  { %181 = vmatpush.bf16.msra.mxu0 %v596_v0  ;;  %v604_v2 = vld [vmem:[#allocation8 + $0x38] sm:$0xff]  ;;  %v603_v3 = vld [vmem:[#allocation8 + $0x30] sm:$0xff]  ;;  %v594_v4 = vld [vmem:[#allocation7 + $0x28] sm:$0xff]  ;;  %s446_s5 = sshll.u32 %s816_s4, 4  ;;  %s447_s5 = int_to_ptr.vmem [resolvable:$true] %s446_s5 }
  0x1d   :  { %263 = vmatpush.bf16.msra.mxu1 %v604_v2  ;;  %v602_v5 = vld [vmem:[#allocation8 + $0x28] sm:$0xff]  ;;  %v593_v6 = vld [vmem:[#allocation7 + $0x20] sm:$0xff]  ;;  %v592_v8 = vld [vmem:[#allocation7 + $0x18] sm:$0xff] }
  0x1e   :  { %v601_v7 = vld [vmem:[#allocation8 + $0x20] sm:$0xff]  ;;  %v600_v9 = vld [vmem:[#allocation8 + $0x18] sm:$0xff]  ;;  %v591_v10 = vld [vmem:[#allocation7 + $0x10] sm:$0xff] }
  0x1f   :  { %v599_v11 = vld [vmem:[#allocation8 + $0x10] sm:$0xff]  ;;  %v590_v12 = vld [vmem:[#allocation7 + $0x8] sm:$0xff]  ;;  %v589_v13 = vld [vmem:[#allocation7] sm:$0xff] }
  0x20   :  { %182 = vmatpush.bf16.msra.mxu0 %v595_v1  ;;  %v115_v14 = vld [vmem:[#allocation2] sm:$0xf]  ;;  %v598_v15 = vld [vmem:[#allocation8 + $0x8] sm:$0xff]  ;;  %v597_v16 = vld [vmem:[#allocation8] sm:$0xff] }
  0x21   :  { %264 = vmatpush.bf16.msra.mxu1 %v603_v3  ;;  %v612_v17 = vld [vmem:[#allocation10 + $0x38] sm:$0xff]  ;;  %v611_v18 = vld [vmem:[#allocation10 + $0x30] sm:$0xff]  ;;  %v610_v19 = vld [vmem:[#allocation10 + $0x28] sm:$0xff] }
  0x22   :  { %345 = vmatpush.bf16.msra.mxu2 %v612_v17  ;;  %v609_v20 = vld [vmem:[#allocation10 + $0x20] sm:$0xff]  ;;  %v608_v21 = vld [vmem:[#allocation10 + $0x18] sm:$0xff]  ;;  %v607_v23 = vld [vmem:[#allocation10 + $0x10] sm:$0xff] }
  0x23   :  { %v114_v22 = vld [vmem:[#allocation5] sm:$0xf]  ;;  %v606_v31 = vld [vmem:[#allocation10 + $0x8] sm:$0xff]  ;;  %v605_v32 = vld [vmem:[#allocation10] sm:$0xff] }
  0x24   :  { %183 = vmatpush.bf16.msra.mxu0 %v594_v4  ;;  %v132_v24 = vperm.slane %v114_v22, 0  ;;  %v620_v33 = vld [vmem:[#allocation11 + $0x38] sm:$0xff]  ;;  %v619_v34 = vld [vmem:[#allocation11 + $0x30] sm:$0xff]  ;;  %v618_v35 = vld [vmem:[#allocation11 + $0x28] sm:$0xff]  ;;  %v214_v39 = vperm.slane %v114_v22, 1  ;;  %v296_v48 = vperm.slane %v114_v22, 2 }
  0x25   :  { %265 = vmatpush.bf16.msra.mxu1 %v602_v5  ;;  %427 = vmatpush.bf16.msra.mxu3 %v620_v33  ;;  %v617_v36 = vld [vmem:[#allocation11 + $0x20] sm:$0xff]  ;;  %v616_v37 = vld [vmem:[#allocation11 + $0x18] sm:$0xff]  ;;  %v615_v38 = vld [vmem:[#allocation11 + $0x10] sm:$0xff]  ;;  %v378_v55 = vperm.slane %v114_v22, 3 }
  0x26   :  { %346 = vmatpush.bf16.msra.mxu2 %v611_v18  ;;  %v614_v46 = vld [vmem:[#allocation11 + $0x8] sm:$0xff]  ;;  %v613_v47 = vld [vmem:[#allocation11] sm:$0xff] }
  0x28   :  { %184 = vmatpush.bf16.msra.mxu0 %v593_v6 }
  0x29   :  { %266 = vmatpush.bf16.msra.mxu1 %v601_v7  ;;  %428 = vmatpush.bf16.msra.mxu3 %v619_v34 }
  0x2a   :  { %347 = vmatpush.bf16.msra.mxu2 %v610_v19 }
  0x2c   :  { %185 = vmatpush.bf16.msra.mxu0 %v592_v8 }
  0x2d   :  { %267 = vmatpush.bf16.msra.mxu1 %v600_v9  ;;  %429 = vmatpush.bf16.msra.mxu3 %v618_v35 }
  0x2e   :  { %348 = vmatpush.bf16.msra.mxu2 %v609_v20 }
  0x30   :  { %186 = vmatpush.bf16.msra.mxu0 %v591_v10 }
  0x31   :  { %268 = vmatpush.bf16.msra.mxu1 %v599_v11  ;;  %430 = vmatpush.bf16.msra.mxu3 %v617_v36 }
  0x32   :  { %349 = vmatpush.bf16.msra.mxu2 %v608_v21 }
  0x34   :  { %187 = vmatpush.bf16.msra.mxu0 %v590_v12 }
  0x35   :  { %269 = vmatpush.bf16.msra.mxu1 %v598_v15  ;;  %431 = vmatpush.bf16.msra.mxu3 %v616_v37 }
  0x36   :  { %350 = vmatpush.bf16.msra.mxu2 %v607_v23 }
  0x38   :  { %188 = vmatpush.bf16.msra.mxu0 %v589_v13 }
  0x39   :  { %270 = vmatpush.bf16.msra.mxu1 %v597_v16  ;;  %432 = vmatpush.bf16.msra.mxu3 %v615_v38 }
  0x3a   :  { %351 = vmatpush.bf16.msra.mxu2 %v606_v31 }
  0x3b   :  { %189 = vmatmul.bf16.vlgmr.msra.gmra.mxu0 %v115_v14 }
  0x3d   :  { %433 = vmatpush.bf16.msra.mxu3 %v614_v46 }
  0x3e   :  { %352 = vmatpush.bf16.msra.mxu2 %v605_v32 }
  0x41   :  { %434 = vmatpush.bf16.msra.mxu3 %v613_v47 }
  0xb8   :  { %v190_v25 = vpop.f32.mrf.mxu0 }
  0xb9   :  { %v191_v26 = vadd.f32 %v190_v25, %v132_v24 }
  0xbb   :  { %v195_v27 = vmul.f32 0.2, %v191_v26  ;;  %vm194_vm0 = vcmp.ge.f32.partialorder %v191_v26, 0.0 }
  0xbd   :  { %v196_v28 = vsel %vm194_vm0, %v191_v26, %v195_v27 }
  0xbe   :  { %v197_v29 = vpack.c.bf16 %v196_v28, %v196_v28 }
  0xc0   :  { %v192_v30 = vpop.f32.mrf.mxu0  ;;  %271 = vmatmul.bf16.vlgmr.msra.gmra.mxu1 %v197_v29 }
 0x13d   :  { %v272_v40 = vpop.f32.mrf.mxu1 }
 0x13e   :  { %v273_v41 = vadd.f32 %v272_v40, %v214_v39 }
 0x140   :  { %v277_v42 = vmul.f32 0.2, %v273_v41  ;;  %vm276_vm1 = vcmp.ge.f32.partialorder %v273_v41, 0.0 }
 0x142   :  { %v278_v43 = vsel %vm276_vm1, %v273_v41, %v277_v42 }
 0x143   :  { %v279_v44 = vpack.c.bf16 %v278_v43, %v278_v43 }
 0x145   :  { %v274_v45 = vpop.f32.mrf.mxu1  ;;  %353 = vmatmul.bf16.vlgmr.msra.gmra.mxu2 %v279_v44 }
 0x1c8   :  { %v354_v49 = vpop.f32.mrf.mxu2 }
 0x1c9   :  { %v355_v50 = vadd.f32 %v354_v49, %v296_v48 }
 0x1cb   :  { %v359_v51 = vmul.f32 0.2, %v355_v50  ;;  %vm358_vm2 = vcmp.ge.f32.partialorder %v355_v50, 0.0 }
 0x1cd   :  { %v360_v52 = vsel %vm358_vm2, %v355_v50, %v359_v51 }
 0x1ce   :  { %v361_v53 = vpack.c.bf16 %v360_v52, %v360_v52 }
 0x1d0   :  { %v356_v54 = vpop.f32.mrf.mxu2  ;;  %435 = vmatmul.bf16.vlgmr.msra.gmra.mxu3 %v361_v53 }
 0x253   :  { %v436_v56 = vpop.f32.mrf.mxu3 }
 0x254   :  { %v437_v57 = vadd.f32 %v436_v56, %v378_v55 }
 0x256   :  { %440 = vst [vmem:[#allocation13] sm:$0xff] %v437_v57 }
 0x257   :  { %451 = dma.vmem_to_hbm [thread:$0]  %s447_s5, 128, %s449_s27, [#allocation4]  }
 0x25b   :  { %v438_v58 = vpop.f32.mrf.mxu3 }
 0x25c   :  { %806 = dma.done.wait [#allocation4], 128  }
 0x25d   :  { %807 = vsyncadd [#allocation4], 4294967168 }
 0x25e   :  { %456 = vsyncpa [#allocation3], 1 }
 0x25f   :  { %457 = vsyncpa [#allocation6], 1 }
 0x260   :  { %458 = vsyncpa [#allocation9], 1 }
 0x261   :  { %459 = vsyncpa [#allocation12], 1 }
 0x262   :  { %460 = vsyncpa [#allocation4], 1 }

</bundles_post_ra>
